<compile_context>
chip_gen: v5e
topology: v5e:2x2
jax: 0.10.0
libtpu: 0.0.40
codegen_flags: <defaults>
</compile_context>

<pallas_src>
import jax
import jax.numpy as jnp
from jax.experimental import pallas as pl
from jax.experimental.pallas import tpu as pltpu


def _round_up(a, b):
    return ((a + b - 1) // b) * b


def _silu(x):
    return x * jax.nn.sigmoid(x)


def _vmem_limit_bytes():
    # ~100 MiB on v5e/v6e (128 MiB physical VMEM), ~56 MiB on v7x (64 MiB/TC).
    try:
        cap = int(pltpu.get_tpu_info().vmem_capacity_bytes)
        return max(32 << 20, min(cap - (8 << 20), 100 << 20))
    except Exception:
        return 48 << 20


def _pick_tile(H, I, tile_t, vmem_budget):
    """Largest tile_i (I itself, or a multiple of 128 dividing I) whose
    double-buffered fused gate+up / down bf16 weight slabs fit the budget."""
    overhead = 2 * tile_t * H * (2 + 4) + (2 << 20)       # x (bf16) + out (f32), 2-buffered
    budget = int(vmem_budget * 0.85) - overhead
    cands = sorted({I} | {c for c in range(128, I, 128) if I % c == 0}, reverse=True)
    for ti in cands:
        if 12 * H * ti <= budget:                          # 2 bufs * (2*H*ti + ti*H) * 2B
            return ti
    return cands[-1]


def _fuse_gate_up(wg, wu, tile_i):
    # (..., H, I) x2 -> (..., H, 2*I) with columns laid out [g_0|u_0|g_1|u_1|...]
    # (each slab tile_i wide), so a contiguous 2*tile_i block at index i is [g_i|u_i].
    *lead, H, I = wg.shape
    n = I // tile_i
    g = wg.reshape(*lead, H, n, tile_i)
    u = wu.reshape(*lead, H, n, tile_i)
    return jnp.concatenate([g, u], axis=-1).reshape(*lead, H, 2 * I)


# ----------------------------- gate (router) kernel -------------------------
def _gate_kernel(x_ref, w_ref, o_ref):
    o_ref[...] = jnp.dot(x_ref[...], w_ref[...], preferred_element_type=jnp.float32)


def _gate_logits(x_pad, gate_w, tile_t, vmem_limit):
    T_pad, H = x_pad.shape
    E = gate_w.shape[1]
    # TODO(synk): on v5e at very large H*E this contraction could use bf16 inputs
    # (f32 accumulation); kept f32 so top-k decisions match the f32 reference.
    return pl.pallas_call(
        _gate_kernel,
        out_shape=jax.ShapeDtypeStruct((T_pad, E), jnp.float32),
        grid=(T_pad // tile_t,),
        in_specs=[
            pl.BlockSpec((tile_t, H), lambda t: (t, 0)),
            pl.BlockSpec((H, E), lambda t: (0, 0)),
        ],
        out_specs=pl.BlockSpec((tile_t, E), lambda t: (t, 0)),
        compiler_params=pltpu.CompilerParams(
            dimension_semantics=("parallel",),
            vmem_limit_bytes=vmem_limit,
        ),
    )(x_pad, gate_w)


# ----------------------------- routed expert kernel -------------------------
def _moe_group_kernel(te_ref, nv_ref, x_ref, w_ref, wgu_ref, wd_ref, o_ref):
    # te_ref (per-tile expert id) only drives the weight index_maps.
    del te_ref
    t = pl.program_id(0)
    i = pl.program_id(1)                 # intermediate (I) reduction axis, innermost

    @pl.when(i == 0)
    def _init():
        o_ref[...] = jnp.zeros_like(o_ref)

    @pl.when(nv_ref[t] > 0)              # skip MXU/VPU work on all-padding tiles
    def _compute():
        ti = wd_ref.shape[0]
        x = x_ref[...]                                                      # (tile_t, H) bf16
        gu = jnp.dot(x, wgu_ref[...], preferred_element_type=jnp.float32)   # (tile_t, 2*ti)
        g = gu[:, :ti]
        u = gu[:, ti:]
        h = (_silu(g) * u).astype(x.dtype)                                  # silu in f32 (VPU/EUP)
        o_ref[...] += jnp.dot(h, wd_ref[...], preferred_element_type=jnp.float32)

    @pl.when(i == pl.num_programs(1) - 1)
    def _finalize():
        o_ref[...] = o_ref[...] * w_ref[...]   # per-row routed scalar (0 on padding rows)


# ----------------------------- shared expert kernel -------------------------
def _shared_mlp_kernel(x_ref, wgu_ref, wd_ref, o_ref):
    i = pl.program_id(1)

    @pl.when(i == 0)
    def _init():
        o_ref[...] = jnp.zeros_like(o_ref)

    ti = wd_ref.shape[0]
    x = x_ref[...]
    gu = jnp.dot(x, wgu_ref[...], preferred_element_type=jnp.float32)
    g = gu[:, :ti]
    u = gu[:, ti:]
    h = (_silu(g) * u).astype(x.dtype)
    o_ref[...] += jnp.dot(h, wd_ref[...], preferred_element_type=jnp.float32)


# ----------------------------- one-time param packing -----------------------
def pack_moe_params(params, *, tile_t=256, tile_i=None, tile_is=None):
    """One-time (model-load) prep: cast expert weights to bf16 and fuse gate+up.
    Avoids any per-forward-call f32->bf16 re-cast / re-layout HBM traffic."""
    H = params["gate_w"].shape[0]
    I = params["wg"].shape[2]
    vmem = _vmem_limit_bytes()
    if tile_i is None:
        tile_i = _pick_tile(H, I, tile_t, vmem)
    packed = {
        "gate_w": params["gate_w"],
        "wgu": _fuse_gate_up(params["wg"], params["wu"], tile_i).astype(jnp.bfloat16),
        "wd": params["wd"].astype(jnp.bfloat16),
        "tile_i": int(tile_i),
        "vmem_limit": int(vmem),
    }
    if params["wgs"] is not None:
        Is = params["wgs"].shape[1]
        if tile_is is None:
            tile_is = _pick_tile(H, Is, tile_t, vmem)
        packed["wgus"] = _fuse_gate_up(params["wgs"], params["wus"], tile_is).astype(jnp.bfloat16)
        packed["wds"] = params["wds"].astype(jnp.bfloat16)
        packed["tile_is"] = int(tile_is)
    else:
        packed["wgus"] = packed["wds"] = None
        packed["tile_is"] = None
    return packed


# ----------------------------- forward wrapper ------------------------------
def deepseek_moe_forward(hidden_states, packed, *, top_k, norm_topk_prob=True, tile_t=256):
    B, S, H = hidden_states.shape
    x = hidden_states.reshape(-1, H).astype(jnp.float32)
    T = x.shape[0]

    gate_w = packed["gate_w"]                  # (H, E) f32
    wgu, wd = packed["wgu"], packed["wd"]      # (E, H, 2I) bf16 fused, (E, I, H) bf16
    E = wgu.shape[0]
    I = wd.shape[1]
    K = top_k
    tile_i = packed["tile_i"]
    vmem_limit = packed["vmem_limit"]

    # token tile: multiple of 16 (bf16 sublane packing), capped by the default.
    tile_t = max(16, min(_round_up(tile_t, 16), _round_up(T, 16)))

    T_pad = _round_up(T, tile_t)
    x_pad = jnp.zeros((T_pad, H), jnp.float32).at[:T].set(x)
    x_bf16 = x_pad.astype(jnp.bfloat16)

    # --- router (f32 so top-k decisions match the f32 reference) -------------
    logits = _gate_logits(x_pad, gate_w, tile_t, vmem_limit)[:T]        # (T, E)
    vals, idx = jax.lax.top_k(logits, K)                                # (T, K)
    rw = jax.nn.softmax(vals, axis=-1) if norm_topk_prob else vals
    # PyTorch quirk: ONE scalar per expert = sum of routing weights over every
    # (token, slot) pair routed to that expert.
    onehot = idx[..., None] == jnp.arange(E)[None, None, :]             # (T, K, E)
    per_expert_wsum = jnp.sum(jnp.where(onehot, rw[..., None], 0.0), axis=(0, 1))  # (E,)

    # --- sort assignments by expert; pad each group to a tile_t multiple -----
    # TODO(synk): the torch boolean-mask gather/scatter has no BlockSpec
    # equivalent; the gather/sort/scatter-add glue stays plain JAX, the heavy
    # grouped matmuls run in the Pallas kernel below.
    A = T * K
    flat_expert = idx.reshape(-1).astype(jnp.int32)                     # (A,), row t*K+k
    order = jnp.argsort(flat_expert)
    sorted_expert = flat_expert[order]
    sorted_token = (order // K).astype(jnp.int32)

    group_sizes = jnp.bincount(flat_expert, length=E)                   # (E,)
    group_start = jnp.cumsum(group_sizes) - group_sizes
    padded_sizes = ((group_sizes + tile_t - 1) // tile_t) * tile_t
    padded_start = jnp.cumsum(padded_sizes) - padded_sizes
    padded_end = jnp.cumsum(padded_sizes)
    total_padded = padded_end[-1]

    P = _round_up(A, tile_t) + E * tile_t        # static bound on padded rows
    n_tiles = P // tile_t
    rank = jnp.arange(A, dtype=jnp.int32) - group_start[sorted_expert]
    dest = (padded_start[sorted_expert] + rank).astype(jnp.int32)

    token_for_row = jnp.zeros((P,), jnp.int32).at[dest].set(sorted_token)
    row_valid = jnp.zeros((P,), jnp.bool_).at[dest].set(True)
    row_w = jnp.zeros((P,), jnp.float32).at[dest].set(per_expert_wsum[sorted_expert])
    row_w = row_w[:, None]                                              # (P, 1)

    tile_start = jnp.arange(n_tiles, dtype=jnp.int32) * tile_t
    # expert id at the tile's true position -> used only for the valid-row count
    te_raw = jnp.minimum(
        jnp.searchsorted(padded_end, tile_start, side="right"), E - 1
    ).astype(jnp.int32)
    tile_valid = jnp.clip(group_sizes[te_raw] - (tile_start - padded_start[te_raw]), 0, tile_t)
    tile_valid = jnp.where(tile_start < total_padded, tile_valid, 0).astype(jnp.int32)
    # expert id used for the weight DMA: trailing all-padding tiles are pinned to
    # the last real tile's expert so the weight block index does not change and
    # Pallas skips the redundant re-DMA.
    tile_start_dma = jnp.minimum(tile_start, jnp.maximum(total_padded - tile_t, 0))
    tile_expert = jnp.minimum(
        jnp.searchsorted(padded_end, tile_start_dma, side="right"), E - 1
    ).astype(jnp.int32)

    # gather routed rows; zero padding rows explicitly (never rely on *0 alone)
    x_sorted = jnp.where(row_valid[:, None], x_bf16[token_for_row], jnp.bfloat16(0))

    n_i = I // tile_i
    y_sorted = pl.pallas_call(
        _moe_group_kernel,
        out_shape=jax.ShapeDtypeStruct((P, H), jnp.float32),
        grid_spec=pltpu.PrefetchScalarGridSpec(
            num_scalar_prefetch=2,
            grid=(n_tiles, n_i),
            in_specs=[
                pl.BlockSpec((tile_t, H), lambda t, i, te, nv: (t, 0)),       # routed rows
                pl.BlockSpec((tile_t, 1), lambda t, i, te, nv: (t, 0)),       # row weights
                # fused gate+up, squeezed expert dim -> kernel sees (H, 2*tile_i)
                pl.BlockSpec((None, H, 2 * tile_i), lambda t, i, te, nv: (te[t], 0, i)),
                # down proj, squeezed expert dim -> kernel sees (tile_i, H)
                pl.BlockSpec((None, tile_i, H), lambda t, i, te, nv: (te[t], i, 0)),
            ],
            out_specs=pl.BlockSpec((tile_t, H), lambda t, i, te, nv: (t, 0)),
        ),
        compiler_params=pltpu.CompilerParams(
            dimension_semantics=("parallel", "arbitrary"),
            vmem_limit_bytes=vmem_limit,
        ),
    )(tile_expert, tile_valid, x_sorted, row_w, wgu, wd)

    # Scatter-add routed results back to token order (padding rows are zero).
    out = jnp.zeros((T, H), jnp.float32).at[token_for_row].add(y_sorted)

    # --- shared expert: fused gate+up, weights resident when tile_is == Is ---
    if packed["wgus"] is not None:
        wgus, wds = packed["wgus"], packed["wds"]
        Is = wds.shape[0]
        tile_is = packed["tile_is"]
        shared = pl.pallas_call(
            _shared_mlp_kernel,
            out_shape=jax.ShapeDtypeStruct((T_pad, H), jnp.float32),
            grid=(T_pad // tile_t, Is // tile_is),
            in_specs=[
                pl.BlockSpec((tile_t, H), lambda t, i: (t, 0)),
                pl.BlockSpec((H, 2 * tile_is), lambda t, i: (0, i)),
                pl.BlockSpec((tile_is, H), lambda t, i: (i, 0)),
            ],
            out_specs=pl.BlockSpec((tile_t, H), lambda t, i: (t, 0)),
            compiler_params=pltpu.CompilerParams(
                dimension_semantics=("parallel", "arbitrary"),
                vmem_limit_bytes=vmem_limit,
            ),
        )(x_bf16, wgus, wds)
        out = out + shared[:T]

    return out.reshape(B, S, H)


# ----------------------------- params & reference ---------------------------
def init_params(key, H, E, I, shared_experts):
    ks = jax.random.split(key, 7)

    def lin(k, fan_in, shape):
        bound = 1.0 / float(fan_in) ** 0.5
        return jax.random.uniform(k, shape, jnp.float32, -bound, bound)

    params = {
        "gate_w": lin(ks[0], H, (H, E)),
        "wg": lin(ks[1], H, (E, H, I)),
        "wu": lin(ks[2], H, (E, H, I)),
        "wd": lin(ks[3], I, (E, I, H)),
    }
    if shared_experts is not None:
        Is = I * shared_experts
        params["wgs"] = lin(ks[4], H, (H, Is))
        params["wus"] = lin(ks[5], H, (H, Is))
        params["wds"] = lin(ks[6], Is, (Is, H))
    else:
        params["wgs"] = params["wus"] = params["wds"] = None
    return params


def _mlp_ref(x, wg, wu, wd):
    hi = jax.lax.Precision.HIGHEST
    g = jnp.dot(x, wg, precision=hi)
    u = jnp.dot(x, wu, precision=hi)
    return jnp.dot(_silu(g) * u, wd, precision=hi)


def reference_forward(hidden_states, params, *, top_k, norm_topk_prob=True):
    """Pure-JAX f32 mirror of the PyTorch loop (incl. the scalar weight-sum quirk)."""
    B, S, H = hidden_states.shape
    x = hidden_states.reshape(-1, H).astype(jnp.float32)
    logits = jnp.dot(x, params["gate_w"], precision=jax.lax.Precision.HIGHEST)
    vals, idx = jax.lax.top_k(logits, top_k)
    rw = jax.nn.softmax(vals, axis=-1) if norm_topk_prob else vals
    E = params["wg"].shape[0]
    out = jnp.zeros_like(x)
    for e in range(E):
        mask = idx == e                            # (T, K)
        sel = mask.any(axis=-1)                    # (T,)
        w_sum = jnp.sum(jnp.where(mask, rw, 0.0))  # scalar == expert_weights.sum()
        eo = _mlp_ref(x, params["wg"][e], params["wu"][e], params["wd"][e])
        out = out + jnp.where(sel[:, None], eo * w_sum, 0.0)
    if params["wgs"] is not None:
        out = out + _mlp_ref(x, params["wgs"], params["wus"], params["wds"])
    return out.reshape(B, S, H)


if __name__ == "__main__":
    B, S, H = 2, 8, 64
    num_experts, top_k, intermediate = 8, 2, 128
    shared_experts = 2

    key = jax.random.PRNGKey(0)
    kx, kp = jax.random.split(key)
    hidden_states = jax.random.normal(kx, (B, S, H), jnp.float32)
    params = init_params(kp, H, num_experts, intermediate, shared_experts)
    packed = pack_moe_params(params)   # one-time bf16 cast + gate/up fusion

    out = deepseek_moe_forward(hidden_states, packed, top_k=top_k, norm_topk_prob=True)
    out = jax.block_until_ready(out)

    ref = reference_forward(hidden_states, params, top_k=top_k, norm_topk_prob=True)
    assert out.shape == (B, S, H)
    max_err = float(jnp.max(jnp.abs(out - ref)))
    # bf16 weights/activations (f32 accumulation) vs a pure-f32 reference:
    # allow ~bf16-level relative error.
    assert jnp.allclose(out, ref, atol=5e-2, rtol=5e-2), f"max abs err = {max_err}"
    print("KERNEL_OK")
</pallas_src>

<mosaic_0001>
module attributes {stable_mosaic.version = 11 : i64} {
  func.func @_gate_kernel(%arg0: i32, %arg1: memref<16x64xf32, #tpu.memory_space<vmem>>, %arg2: memref<64x8xf32, #tpu.memory_space<vmem>>, %arg3: memref<16x8xf32, #tpu.memory_space<vmem>>) attributes {dimension_semantics = [#tpu.dimension_semantics<parallel>], iteration_bounds = array<i64: 1>, scalar_prefetch = 0 : i64, scratch_operands = 0 : i64, tpu.core_type = #tpu.core_type<tc>, window_params = [{transform_indices = @transform_0, window_bounds = array<i64: 16, 64>}, {pipeline_mode = #tpu.pipeline_mode<synchronous>, transform_indices = @transform_1, window_bounds = array<i64: 64, 8>}, {transform_indices = @transform_2, window_bounds = array<i64: 16, 8>}]} {
    %c0 = arith.constant 0 : index
    %c0_0 = arith.constant 0 : index
    %0 = vector.load %arg1[%c0, %c0_0] : memref<16x64xf32, #tpu.memory_space<vmem>>, vector<16x64xf32>
    %c0_1 = arith.constant 0 : index
    %c0_2 = arith.constant 0 : index
    %1 = vector.load %arg2[%c0_1, %c0_2] : memref<64x8xf32, #tpu.memory_space<vmem>>, vector<64x8xf32>
    %cst = arith.constant dense<0.000000e+00> : vector<16x8xf32>
    %2 = tpu.matmul %0, %1, %cst {dimension_numbers = #tpu.dot_dimension_numbers<[1], [0], [0], [1], [0, 0, 1, 1], [], []>} : vector<16x64xf32>, vector<64x8xf32>, vector<16x8xf32> -> vector<16x8xf32>
    %c0_3 = arith.constant 0 : index
    %c0_4 = arith.constant 0 : index
    %3 = vector.load %arg3[%c0_3, %c0_4] : memref<16x8xf32, #tpu.memory_space<vmem>>, vector<16x8xf32>
    tpu.vector_store %arg3[%c0_3, %c0_4], %2 {strides = array<i32>} : memref<16x8xf32, #tpu.memory_space<vmem>>, vector<16x8xf32>,
    return
  }
  func.func @transform_0(%arg0: i32) -> (i32, i32) {
    %c0_i32 = arith.constant 0 : i32
    %c0_i32_0 = arith.constant 0 : i32
    return %arg0, %c0_i32 : i32, i32
  }
  func.func @transform_1(%arg0: i32) -> (i32, i32) {
    %c0_i32 = arith.constant 0 : i32
    %c0_i32_0 = arith.constant 0 : i32
    %c0_i32_1 = arith.constant 0 : i32
    return %c0_i32, %c0_i32_0 : i32, i32
  }
  func.func @transform_2(%arg0: i32) -> (i32, i32) {
    %c0_i32 = arith.constant 0 : i32
    %c0_i32_0 = arith.constant 0 : i32
    return %arg0, %c0_i32 : i32, i32
  }
}

</mosaic_0001>

<bundles_post_ra>
// kernel: tpu_custom_call.1
= control target key start
LH: loop header
LB: loop body
LE: loop exit
PB: predicated region body
PF: predicated region fallthrough
CT: control target
= control target key end

     0   :  { %vm21_vm0 = vcmask 523264   ;;  %vm51_vm1 = vcmask 64512   ;;  %s119_s1 = inlined_call_operand.vmem [shape: f32[64,8], index: 1, kind: input, shape index: {}]   ;;  %s120_s0 = inlined_call_operand.vmem [shape: f32[16,64], index: 0, kind: input, shape index: {}]   ;;  %s121_s2 = inlined_call_operand.vmem [shape: f32[16,8], index: 2, kind: output, shape index: {}]  }
   0x1   :  { %v20_v0 = vld [vmem:[%s119_s1 + $0x38] sm:$0xff]  ;;  %v19_v1 = vld [vmem:[%s119_s1 + $0x30] sm:$0xff]  ;;  %v18_v2 = vld [vmem:[%s119_s1 + $0x28] sm:$0xff] }
   0x2   :  { %36 = vmatpush.msra.mxu0 %v20_v0  ;;  %60 = vmatpush.msra.mxu1 %v20_v0  ;;  %v17_v3 = vld [vmem:[%s119_s1 + $0x20] sm:$0xff]  ;;  %v16_v4 = vld [vmem:[%s119_s1 + $0x18] sm:$0xff]  ;;  %v15_v5 = vld [vmem:[%s119_s1 + $0x10] sm:$0xff] }
   0x3   :  { %v14_v6 = vld [vmem:[%s119_s1 + $0x8] sm:$0xff]  ;;  %v13_v7 = vld [vmem:[%s119_s1] sm:$0xff] }
   0x4   :  { %37 = vmatpush.msra.mxu0 %v19_v1  ;;  %61 = vmatpush.msra.mxu1 %v19_v1  ;;  %v11_v8 = vld [vmem:[%s120_s0] sm:$0xff]  ;;  %v12_v9 = vld [vmem:[%s120_s0 + $0x8] sm:$0xff] }
   0x6   :  { %38 = vmatpush.msra.mxu0 %v18_v2  ;;  %62 = vmatpush.msra.mxu1 %v18_v2 }
   0x8   :  { %39 = vmatpush.msra.mxu0 %v17_v3  ;;  %63 = vmatpush.msra.mxu1 %v17_v3 }
   0xa   :  { %40 = vmatpush.msra.mxu0 %v16_v4  ;;  %64 = vmatpush.msra.mxu1 %v16_v4 }
   0xc   :  { %41 = vmatpush.msra.mxu0 %v15_v5  ;;  %65 = vmatpush.msra.mxu1 %v15_v5 }
   0xe   :  { %42 = vmatpush.msra.mxu0 %v14_v6  ;;  %66 = vmatpush.msra.mxu1 %v14_v6 }
  0x10   :  { %43 = vmatpush.msra.mxu0 %v13_v7  ;;  %67 = vmatpush.msra.mxu1 %v13_v7 }
  0x11   :  { %58 = vmatmul.msk.f32.vlgmr.msra.gmra.mxu0 %vm21_vm0, %v11_v8  ;;  %59 = vmatmul.msk.f32.vlgmr.msra.gmra.mxu1 %vm21_vm0, %v12_v9 }
  0x8e   :  { %v45_v10 = vpop.f32.mrf.mxu0  ;;  %v48_v11 = vpop.f32.mrf.mxu1 }
  0x8f   :  { %52 = vst.msk [vmem:[%s121_s2] sm:$0xff] %vm51_vm1, %v45_v10 }
  0x90   :  { %53 = vst.msk [vmem:[%s121_s2 + $0x8] sm:$0xff] %vm51_vm1, %v48_v11 }

</bundles_post_ra>
